<compile_context>
chip_gen: v5e
topology: v5e:2x2
jax: 0.10.0
libtpu: 0.0.40
codegen_flags: <defaults>
</compile_context>

<pallas_src>
import jax
import jax.numpy as jnp
from jax.experimental import pallas as pl
from jax.experimental.pallas import tpu as pltpu


def _lane_neck_kernel(x_ref, w_ref, b_ref, o_ref):
    # x_ref: (bn, C_in, thw)   activation tile (bn batch elements, thw pixels)
    # w_ref: (C_out, C_in)     1x1-conv weight with BN scale folded in (f32)
    # b_ref: (C_out, 1)        folded BN bias (f32)
    # o_ref: (bn, C_out, thw)  lane-dense output tile
    w = w_ref[...]
    b = b_ref[...]
    for i in range(x_ref.shape[0]):  # static, unrolled (bn is small)
        acc = jnp.dot(w, x_ref[i], preferred_element_type=jnp.float32)
        o_ref[i] = jnp.maximum(acc + b, 0.0).astype(o_ref.dtype)


def lane_neck_forward(x_nchw, conv_w, bn_gamma, bn_beta, bn_mean, bn_var,
                      eps=1e-5):
    """x_nchw: (N, 256, H, W) f32/bf16. Returns (N, 4*H*W) in x's dtype."""
    N, C_in, H, W = x_nchw.shape
    C_out = conv_w.shape[0]
    HW = H * W
    x_dtype = x_nchw.dtype
    itemsize = jnp.dtype(x_dtype).itemsize

    # Fold eval-mode BatchNorm into the 1x1 conv: y = (scale*W) x + (beta - mean*scale)
    scale = (bn_gamma.astype(jnp.float32) /
             jnp.sqrt(bn_var.astype(jnp.float32) + eps))                  # (C_out,)
    w_mat = (conv_w.reshape(C_out, C_in).astype(jnp.float32)
             * scale[:, None]).astype(jnp.float32)                        # (C_out, C_in)
    bias = (bn_beta.astype(jnp.float32)
            - bn_mean.astype(jnp.float32) * scale).reshape(C_out, 1)      # (C_out, 1)

    # NCHW -> (N, C_in, H*W): pure reshape, no data movement, no dtype change.
    x3 = x_nchw.reshape(N, C_in, HW)

    # --- generation-aware tile selection (maximize bytes moved per grid step) ---
    try:
        vmem_cap = int(pltpu.get_tpu_info().vmem_capacity_bytes)
    except Exception:
        vmem_cap = 64 << 20  # conservative (v7x-sized) fallback
    in_budget = max(1 << 20, vmem_cap // 8)  # per-buffer input-tile byte budget

    if HW * C_in * itemsize > in_budget:
        # Large spatial: tile H*W with a lane-aligned tile. Ragged tail handled
        # by Pallas partial last blocks (no jnp.pad -> no extra HBM pass).
        bn = 1
        thw = max(128, (in_budget // (C_in * itemsize)) // 128 * 128)
        grid_hw = pl.cdiv(HW, thw)
    else:
        # Small spatial: whole H*W is one tile; pack several batch elements per
        # grid step so each step still moves a worthwhile chunk of HBM.
        thw = HW
        grid_hw = 1
        max_bn = max(1, in_budget // max(1, C_in * HW * itemsize))
        bn = 1
        for cand in range(min(N, max_bn), 0, -1):
            if N % cand == 0:
                bn = cand
                break
        if N >= 2 and bn == N:
            # Keep >= 2 grid steps so both v7x TensorCores get work.
            bn = max(d for d in range(1, N // 2 + 1) if N % d == 0)

    grid_n = N // bn

    # VMEM budget: double-buffered input + output tiles, weights, headroom.
    needed = (2 * bn * C_in * thw * itemsize
              + 2 * bn * C_out * thw * itemsize
              + C_out * C_in * 4 + (1 << 20))
    vmem_limit = int(min(max(vmem_cap - (8 << 20), 16 << 20),
                         max(32 << 20, needed + (8 << 20))))

    cost = pl.CostEstimate(
        flops=2 * N * C_out * C_in * HW,
        transcendentals=0,
        bytes_accessed=int(N * C_in * HW * itemsize
                           + N * C_out * HW * itemsize
                           + C_out * C_in * 4),
    )

    out = pl.pallas_call(
        _lane_neck_kernel,
        out_shape=jax.ShapeDtypeStruct((N, C_out, HW), x_dtype),
        grid_spec=pltpu.PrefetchScalarGridSpec(
            num_scalar_prefetch=0,
            grid=(grid_n, grid_hw),
            in_specs=[
                # Activation tile: (bn, C_in, thw) in VMEM.
                pl.BlockSpec((bn, C_in, thw), lambda i, j: (i, 0, j)),
                # Weight (BN-scaled) and bias: resident, same block every step.
                pl.BlockSpec((C_out, C_in), lambda i, j: (0, 0)),
                pl.BlockSpec((C_out, 1), lambda i, j: (0, 0)),
            ],
            out_specs=pl.BlockSpec((bn, C_out, thw), lambda i, j: (i, 0, j)),
        ),
        compiler_params=pltpu.CompilerParams(
            dimension_semantics=("parallel", "parallel"),
            vmem_limit_bytes=vmem_limit),
        cost_estimate=cost,
    )(x3, w_mat, bias)

    # (N, C_out, H*W) is already NCHW order -> flatten(1) is a reshape.
    return out.reshape(N, C_out * HW)


def _reference(x_nchw, conv_w, bn_gamma, bn_beta, bn_mean, bn_var, eps=1e-5):
    # Pure-JAX reference of the same forward (1x1 conv, eval-mode BN, ReLU).
    N, C_in, H, W = x_nchw.shape
    C_out = conv_w.shape[0]
    w_mat = conv_w.reshape(C_out, C_in)
    y = jnp.einsum('nchw,oc->nohw', x_nchw.astype(jnp.float32),
                   w_mat.astype(jnp.float32))
    scale = bn_gamma / jnp.sqrt(bn_var + eps)
    y = y * scale[None, :, None, None] + (bn_beta - bn_mean * scale)[None, :, None, None]
    y = jnp.maximum(y, 0.0)
    return y.reshape(N, C_out * H * W)


if __name__ == "__main__":
    key = jax.random.PRNGKey(0)
    k_x, k_w, k_g, k_b, k_m, k_v = jax.random.split(key, 6)

    N, C_in, H, W, C_out = 2, 256, 16, 16, 4

    x = jax.random.normal(k_x, (N, C_in, H, W), dtype=jnp.float32)
    conv_w = jax.random.normal(k_w, (C_out, C_in, 1, 1), dtype=jnp.float32) * 0.05
    bn_gamma = 1.0 + 0.1 * jax.random.normal(k_g, (C_out,), dtype=jnp.float32)
    bn_beta = 0.1 * jax.random.normal(k_b, (C_out,), dtype=jnp.float32)
    bn_mean = 0.1 * jax.random.normal(k_m, (C_out,), dtype=jnp.float32)
    bn_var = jnp.abs(1.0 + 0.1 * jax.random.normal(k_v, (C_out,), dtype=jnp.float32))

    out = lane_neck_forward(x, conv_w, bn_gamma, bn_beta, bn_mean, bn_var)
    out = jax.block_until_ready(out)

    ref = _reference(x, conv_w, bn_gamma, bn_beta, bn_mean, bn_var)
    assert out.shape == (N, C_out * H * W), out.shape
    assert jnp.allclose(out, ref, atol=1e-4, rtol=1e-4), \
        float(jnp.max(jnp.abs(out - ref)))

    print("KERNEL_OK")
</pallas_src>

<mosaic_0001>
module attributes {stable_mosaic.version = 11 : i64} {
  func.func @_lane_neck_kernel(%arg0: i32, %arg1: i32, %arg2: memref<1x256x256xf32, #tpu.memory_space<vmem>>, %arg3: memref<4x256xf32, #tpu.memory_space<vmem>>, %arg4: memref<4x1xf32, #tpu.memory_space<vmem>>, %arg5: memref<1x4x256xf32, #tpu.memory_space<vmem>>) attributes {dimension_semantics = [#tpu.dimension_semantics<parallel>, #tpu.dimension_semantics<parallel>], iteration_bounds = array<i64: 2, 1>, scalar_prefetch = 0 : i64, scratch_operands = 0 : i64, tpu.core_type = #tpu.core_type<tc>, window_params = [{transform_indices = @transform_0, window_bounds = array<i64: 1, 256, 256>}, {pipeline_mode = #tpu.pipeline_mode<synchronous>, transform_indices = @transform_1, window_bounds = array<i64: 4, 256>}, {pipeline_mode = #tpu.pipeline_mode<synchronous>, transform_indices = @transform_2, window_bounds = array<i64: 4, 1>}, {transform_indices = @transform_3, window_bounds = array<i64: 1, 4, 256>}]} {
    %c0 = arith.constant 0 : index
    %c0_0 = arith.constant 0 : index
    %0 = vector.load %arg3[%c0, %c0_0] : memref<4x256xf32, #tpu.memory_space<vmem>>, vector<4x256xf32>
    %c0_1 = arith.constant 0 : index
    %c0_2 = arith.constant 0 : index
    %1 = vector.load %arg4[%c0_1, %c0_2] : memref<4x1xf32, #tpu.memory_space<vmem>>, vector<4x1xf32>
    %c0_3 = arith.constant 0 : index
    %c0_4 = arith.constant 0 : index
    %c0_5 = arith.constant 0 : index
    %2 = vector.load %arg2[%c0_3, %c0_4, %c0_5] : memref<1x256x256xf32, #tpu.memory_space<vmem>>, vector<1x256x256xf32>
    %3 = vector.shape_cast %2 : vector<1x256x256xf32> to vector<256x256xf32>
    %cst = arith.constant dense<0.000000e+00> : vector<4x256xf32>
    %4 = tpu.matmul %0, %3, %cst {dimension_numbers = #tpu.dot_dimension_numbers<[1], [0], [0], [1], [0, 0, 1, 1], [], []>} : vector<4x256xf32>, vector<256x256xf32>, vector<4x256xf32> -> vector<4x256xf32>
    %5 = vector.broadcast %1 : vector<4x1xf32> to vector<4x256xf32>
    %6 = arith.addf %4, %5 : vector<4x256xf32>
    %cst_6 = arith.constant 0.000000e+00 : f32
    %7 = vector.broadcast %cst_6 : f32 to vector<4x256xf32>
    %8 = arith.maximumf %6, %7 : vector<4x256xf32>
    %c0_7 = arith.constant 0 : index
    %c0_8 = arith.constant 0 : index
    %c0_9 = arith.constant 0 : index
    %9 = vector.load %arg5[%c0_7, %c0_8, %c0_9] : memref<1x4x256xf32, #tpu.memory_space<vmem>>, vector<1x4x256xf32>
    %10 = vector.shape_cast %9 : vector<1x4x256xf32> to vector<4x256xf32>
    %11 = vector.shape_cast %8 : vector<4x256xf32> to vector<1x4x256xf32>
    tpu.vector_store %arg5[%c0_7, %c0_8, %c0_9], %11 {strides = array<i32>} : memref<1x4x256xf32, #tpu.memory_space<vmem>>, vector<1x4x256xf32>,
    return
  }
  func.func @transform_0(%arg0: i32, %arg1: i32) -> (i32, i32, i32) {
    %c0_i32 = arith.constant 0 : i32
    %c0_i32_0 = arith.constant 0 : i32
    return %arg0, %c0_i32, %arg1 : i32, i32, i32
  }
  func.func @transform_1(%arg0: i32, %arg1: i32) -> (i32, i32) {
    %c0_i32 = arith.constant 0 : i32
    %c0_i32_0 = arith.constant 0 : i32
    %c0_i32_1 = arith.constant 0 : i32
    return %c0_i32, %c0_i32_0 : i32, i32
  }
  func.func @transform_2(%arg0: i32, %arg1: i32) -> (i32, i32) {
    %c0_i32 = arith.constant 0 : i32
    %c0_i32_0 = arith.constant 0 : i32
    %c0_i32_1 = arith.constant 0 : i32
    return %c0_i32, %c0_i32_0 : i32, i32
  }
  func.func @transform_3(%arg0: i32, %arg1: i32) -> (i32, i32, i32) {
    %c0_i32 = arith.constant 0 : i32
    %c0_i32_0 = arith.constant 0 : i32
    return %arg0, %c0_i32, %arg1 : i32, i32, i32
  }
}

</mosaic_0001>

<bundles_post_ra>
// kernel: tpu_custom_call.1
= control target key start
LH: loop header
LB: loop body
LE: loop exit
PB: predicated region body
PF: predicated region fallthrough
CT: control target
= control target key end

     0   :  { %s994_s0 = inlined_call_operand.hbm [shape: f32[2,256,256], index: 0, kind: input, shape index: {}]   ;;  %s995_s1 = inlined_call_operand.hbm [shape: f32[4,256], index: 1, kind: input, shape index: {}]   ;;  %s996_s2 = inlined_call_operand.vmem [shape: f32[4,1], index: 2, kind: input, shape index: {}]   ;;  %s997_s3 = inlined_call_operand.hbm [shape: f32[2,4,256], index: 3, kind: output, shape index: {}]  }
   0x1   :  { %998 = sst [smem:[#allocation11_spill]] %s995_s1 }
   0x2   :  { %8 = vsyncpa [#allocation3], 0 }
   0x3   :  { %10 = vsyncpa [#allocation3 + $0x1], 0 }
   0x4   :  { %11 = vsyncpa [#allocation6], 0 }
   0x5   :  { %12 = vsyncpa [#allocation4], 0 }
   0x6   :  { %14 = vsyncpa [#allocation4 + $0x1], 0  ;;  %s773_s12 = smov 0   ;;  %s775_s13 = smov 0  }
   0x7   :  { %s777_s14 = smov 0   ;;  %s779_s15 = smov 0  }
   0x8   :  { %s781_s16 = smov 0   ;;  %s783_s17 = smov 0  }
   0x9 LB: > { %s505_s18 = sadd.s32 4294967295, %s747_s17   ;;  %s506_s19 = sadd.s32 4294967294, %s747_s17   ;;  %s747_s17 = sphi %s783_s17, %s20_s17   ;;  %s743_s16 = sphi %s781_s16, %s1011_s16   ;;  %s739_s15 = sphi %s779_s15, %s1010_s15   ;;  %s735_s14 = sphi %s777_s14, %s1009_s14   ;;  %s731_s13 = sphi %s775_s13, %s1008_s13   ;;  %s727_s12 = sphi %s773_s12, %s1007_s12  }
   0xa   : > { %s41_s20 = sadd.s32 1, %s735_s14  ;;  %p48_p0 = scmp.ne.s32.totalorder %s735_s14, %s731_s13 }
   0xb   : > { %p49_p1 = scmp.eq.s32.totalorder %s747_s17, 0  ;;  %p54_p2 = scmp.ne.s32.totalorder %s731_s13, %s727_s12 }
   0xc   : > { %p811_p3 = scmp.eq.s32.totalorder %s505_s18, 0  ;;  %p122_p4 = scmp.eq.s32.totalorder %s505_s18, 1 }
   0xd   : > { %p815_p5 = por %p49_p1, %p48_p0  ;;  %p128_p6 = scmp.eq.s32.totalorder %s506_s19, 1 }
   0xe   : > { %p821_p7 = por %p811_p3, %p54_p2  ;;  %p825_p8 = por %p122_p4, %p48_p0 }
   0xf   : > { %p829_p9 = por %p128_p6, %p54_p2  ;;  %p507_p10 = scmp.ge.s32.totalorder %s747_s17, 1 }
  0x10   : > { %p135_p11 = scmp.lt.s32.totalorder %s747_s17, 3  ;;  %s1004_s1 = sld [smem:[#allocation11_spill]] }
  0x11   : > { %s749_s30 = smov [#allocation5]   ;;  %p509_p13 = scmp.ge.s32.totalorder %s747_s17, 2 }
  0x12   : > { %p838_p12 = pnand %p507_p10, %p135_p11  ;;  %s149_s4 = sshll.u32 %s749_s30, 4  ;;  %s150_s4 = int_to_ptr.vmem [resolvable:$true] %s149_s4 }
  0x13   : > { %p545_p1 = scmp.lt.s32.totalorder %s747_s17, 2  ;;  %s32_s6 = sadd.s32 1, %s743_s16 }
  0x14   : > { %p532_p0 = pneg %p838_p12  ;;  %p34_p6 = scmp.ge.s32.totalorder %s32_s6, 2 }
  0x15   : > { %p850_p4 = pnand %p545_p1, %p815_p5  ;;  %s163_s7 = sand.u32 1, %s735_s14  }
  0x16   : > { %s147_s28 = sshll.u32 %s1004_s1, 4  ;;  %p533_p2 = pnand %p532_p0, %p811_p3  ;;  %s148_s28 = int_to_ptr.hbm [resolvable:$true] %s147_s28 }
  0x17   : > { %s1013_s6 = smov (%p34_p6, %s32_s6), 0  ;;  %s510_s8 = sshll.u32 %s163_s7, 9 }
  0x18   : > { %535 = dma.hbm_to_vmem [thread:$0]  (!%p533_p2), %s148_s28, 128, %s150_s4, [#allocation6]  }
  0x19   : > { %s36_s9 = ssub.s32 %s743_s16, %s1013_s6  ;;  %s522_s10 = sshll.u32 %s743_s16, 9 }
  0x1a   : > { %p39_p10 = scmp.eq.s32.totalorder %s36_s9, 0  ;;  %s174_s19 = scalar_lea.hbm %s994_s0, %s522_s10 }
  0x1b   : > { %s167_s22 = scalar_lea.vmem [#allocation2], %s510_s8  ;;  %s175_s30 = sshll.u32 %s174_s19, 4  ;;  %s176_s30 = int_to_ptr.hbm [resolvable:$true] %s175_s30 }
  0x1c   : > { %s177_s26 = sshll.u32 %s167_s22, 4  ;;  %s164_s28 = scalar_lea.sflag [#allocation3], %s163_s7  ;;  %s178_s26 = int_to_ptr.vmem [resolvable:$true] %s177_s26 }
  0x1d   : > { %s867_s27 = scalar_select %p39_p10, %s735_s14, %s41_s20  }
  0x1e   : > { %s750_s4 = smov 256   ;;  %s751_s1 = smov 16  }
  0x1f   : > { %539 = dma.hbm_to_vmem [thread:$0]  (!%p850_p4), %s176_s30, 8192, %s178_s26, %s164_s28, %s750_s4, %s750_s4, %s751_s1  }
  0x20   : > { %189 = sbr.rel (%p838_p12) target bundleno = 216 (0xd8), region = 32  ;;  %s874_s9 = sand.u32 (!%p838_p12), 1, %s731_s13  }
  0x21   : > { %s514_s8 = sshll.u32 (!%p838_p12), %s874_s9, 9  ;;  %s192_s20 = scalar_lea.sflag (!%p838_p12), [#allocation3], %s874_s9 }
  0x22   : > { %s878_s10 = scalar_lea.vmem (!%p838_p12), [#allocation2], %s514_s8 }
  0x25   : > { %714 = dma.done.wait (%p821_p7), %s192_s20, 8192  }
  0x26   : > { %716 = vsyncadd (%p821_p7), %s192_s20, 4294959104 }
  0x27   : > { %718 = dma.done.wait (%p811_p3), [#allocation6], 128  }
  0x28   : > { %720 = vsyncadd (%p811_p3), [#allocation6], 4294967168  ;;  %v259_v0 = vld [vmem:[%s878_s10 + $0xf8] sm:$0xff]  ;;  %v257_v1 = vld [vmem:[%s878_s10 + $0xe8] sm:$0xff]  ;;  %s516_s23 = sshll.u32 %s874_s9, 3  ;;  %s523_s29 = sshll.u32 %s739_s15, 3 }
  0x29   : > { %v291_v2 = vld [vmem:[%s878_s10 + $0x1f8] sm:$0xff]  ;;  %343 = vmatpush.msra.mxu2 %v259_v0  ;;  %v289_v3 = vld [vmem:[%s878_s10 + $0x1e8] sm:$0xff]  ;;  %v258_v4 = vld [vmem:[%s878_s10 + $0xf0] sm:$0xff]  ;;  %s406_s11 = scalar_lea.hbm %s997_s3, %s523_s29  ;;  %s223_s18 = scalar_lea.vmem [#allocation7], %s516_s23  ;;  %vm388_vm0 = vcmask 1043456  }
  0x2a   : > { %363 = vmatpush.msra.mxu3 %v291_v2  ;;  %v255_v5 = vld [vmem:[%s878_s10 + $0xd8] sm:$0xff]  ;;  %303 = vmatpush.msra.mxu0 %v258_v4  ;;  %v256_v7 = vld [vmem:[%s878_s10 + $0xe0] sm:$0xff]  ;;  %v253_v8 = vld [vmem:[%s878_s10 + $0xc8] sm:$0xff]  ;;  %v752_v4 = vmov 0   ;;  %s408_s19 = sshll.u32 %s223_s18, 4  ;;  %s410_s22 = sshll.u32 %s406_s11, 4  ;;  %s409_s19 = int_to_ptr.vmem [resolvable:$true] %s408_s19  ;;  %s411_s22 = int_to_ptr.hbm [resolvable:$true] %s410_s22 }
  0x2b   : > { %v287_v6 = vld [vmem:[%s878_s10 + $0x1d8] sm:$0xff]  ;;  %344 = vmatpush.msra.mxu2 %v257_v1  ;;  %v290_v9 = vld [vmem:[%s878_s10 + $0x1f0] sm:$0xff]  ;;  %v285_v10 = vld [vmem:[%s878_s10 + $0x1c8] sm:$0xff]  ;;  %600 = vset.pattern.permute.xlu0 %v752_v4  ;;  %s393_s15 = scalar_lea.sflag [#allocation4], %s874_s9  ;;  %s675_s26 = sshra.s32 %s411_s22, 4  ;;  %s676_s26 = int_to_ptr.hbm [resolvable:$true] %s675_s26 }
  0x2c   : > { %364 = vmatpush.msra.mxu3 %v289_v3  ;;  %304 = vmatpush.msra.mxu0 %v256_v7  ;;  %v254_v11 = vld [vmem:[%s878_s10 + $0xd0] sm:$0xff]  ;;  %v288_v12 = vld [vmem:[%s878_s10 + $0x1e0] sm:$0xff]  ;;  %v251_v15 = vld [vmem:[%s878_s10 + $0xb8] sm:$0xff]  ;;  %s677_s30 = scalar_lea.hbm %s676_s26, 8  ;;  %s681_s8 = scalar_lea.hbm %s997_s3, 16 }
  0x2d   : > { %323 = vmatpush.msra.mxu1 %v290_v9  ;;  %345 = vmatpush.msra.mxu2 %v255_v5  ;;  %v252_v13 = vld [vmem:[%s878_s10 + $0xc0] sm:$0xff]  ;;  %v286_v14 = vld [vmem:[%s878_s10 + $0x1d0] sm:$0xff]  ;;  %v283_v16 = vld [vmem:[%s878_s10 + $0x1b8] sm:$0xff]  ;;  %p678_p3 = scmp.ne.s32.totalorder %s676_s26, %s677_s30  ;;  %p682_p11 = scmp.lt.s32.totalorder %s676_s26, %s997_s3 }
  0x2e   : > { %365 = vmatpush.msra.mxu3 %v287_v6  ;;  %305 = vmatpush.msra.mxu0 %v254_v11  ;;  %v250_v17 = vld [vmem:[%s878_s10 + $0xb0] sm:$0xff]  ;;  %v284_v18 = vld [vmem:[%s878_s10 + $0x1c0] sm:$0xff]  ;;  %v249_v19 = vld [vmem:[%s878_s10 + $0xa8] sm:$0xff]  ;;  %p683_p12 = scmp.lt.s32.totalorder %s681_s8, %s677_s30 }
  0x2f   : > { %324 = vmatpush.msra.mxu1 %v288_v12  ;;  %346 = vmatpush.msra.mxu2 %v253_v8  ;;  %v281_v20 = vld [vmem:[%s878_s10 + $0x1a8] sm:$0xff]  ;;  %v248_v21 = vld [vmem:[%s878_s10 + $0xa0] sm:$0xff]  ;;  %v282_v22 = vld [vmem:[%s878_s10 + $0x1b0] sm:$0xff]  ;;  %p679_p5 = pnand %p678_p3, %p825_p8 }
  0x30   : > { %366 = vmatpush.msra.mxu3 %v285_v10  ;;  %306 = vmatpush.msra.mxu0 %v252_v13  ;;  %v247_v23 = vld [vmem:[%s878_s10 + $0x98] sm:$0xff]  ;;  %v246_v25 = vld [vmem:[%s878_s10 + $0x90] sm:$0xff]  ;;  %v280_v26 = vld [vmem:[%s878_s10 + $0x1a0] sm:$0xff]  ;;  %p684_p0 = por %p683_p12, %p682_p11 }
  0x31   : > { %325 = vmatpush.msra.mxu1 %v286_v14  ;;  %347 = vmatpush.msra.mxu2 %v251_v15  ;;  %v279_v24 = vld [vmem:[%s878_s10 + $0x198] sm:$0xff]  ;;  %v245_v27 = vld [vmem:[%s878_s10 + $0x88] sm:$0xff]  ;;  %v244_v29 = vld [vmem:[%s878_s10 + $0x80] sm:$0xff]  ;;  %p680_p7 = pneg %p679_p5 }
  0x32   : > { %367 = vmatpush.msra.mxu3 %v283_v16  ;;  %307 = vmatpush.msra.mxu0 %v250_v17  ;;  %v277_v28 = vld [vmem:[%s878_s10 + $0x188] sm:$0xff]  ;;  %v278_v30 = vld [vmem:[%s878_s10 + $0x190] sm:$0xff]  ;;  %v243_v31 = vld [vmem:[%s878_s10 + $0x78] sm:$0xff] }
  0x33   : > { %326 = vmatpush.msra.mxu1 %v284_v18  ;;  %348 = vmatpush.msra.mxu2 %v249_v19  ;;  %v275_v32 = vld [vmem:[%s878_s10 + $0x178] sm:$0xff]  ;;  %v242_v33 = vld [vmem:[%s878_s10 + $0x70] sm:$0xff]  ;;  %v276_v34 = vld [vmem:[%s878_s10 + $0x180] sm:$0xff]  ;;  %p685_p1 = pnand %p684_p0, %p680_p7 }
  0x34   : > { %368 = vmatpush.msra.mxu3 %v281_v20  ;;  %308 = vmatpush.msra.mxu0 %v248_v21  ;;  %v241_v35 = vld [vmem:[%s878_s10 + $0x68] sm:$0xff]  ;;  %v240_v37 = vld [vmem:[%s878_s10 + $0x60] sm:$0xff]  ;;  %v274_v38 = vld [vmem:[%s878_s10 + $0x170] sm:$0xff] }
  0x35   : > { %327 = vmatpush.msra.mxu1 %v282_v22  ;;  %349 = vmatpush.msra.mxu2 %v247_v23  ;;  %v273_v36 = vld [vmem:[%s878_s10 + $0x168] sm:$0xff]  ;;  %v239_v39 = vld [vmem:[%s878_s10 + $0x58] sm:$0xff]  ;;  %v226_v41 = vld [vmem:[#allocation5] sm:$0xff] }
  0x36   : > { %369 = vmatpush.msra.mxu3 %v279_v24  ;;  %309 = vmatpush.msra.mxu0 %v246_v25  ;;  %v271_v40 = vld [vmem:[%s878_s10 + $0x158] sm:$0xff]  ;;  %v238_v42 = vld [vmem:[%s878_s10 + $0x50] sm:$0xff]  ;;  %v272_v43 = vld [vmem:[%s878_s10 + $0x160] sm:$0xff]  ;;  %298 = vst [vmem:[#allocation1] ss:$2 sm:$0xff] %v226_v41 }
  0x37   : > { %328 = vmatpush.msra.mxu1 %v280_v26  ;;  %350 = vmatpush.msra.mxu2 %v245_v27  ;;  %v237_v44 = vld [vmem:[%s878_s10 + $0x48] sm:$0xff]  ;;  %v236_v46 = vld [vmem:[%s878_s10 + $0x40] sm:$0xff]  ;;  %v270_v47 = vld [vmem:[%s878_s10 + $0x150] sm:$0xff] }
  0x38   : > { %370 = vmatpush.msra.mxu3 %v277_v28  ;;  %310 = vmatpush.msra.mxu0 %v244_v29  ;;  %v269_v45 = vld [vmem:[%s878_s10 + $0x148] sm:$0xff]  ;;  %v235_v48 = vld [vmem:[%s878_s10 + $0x38] sm:$0xff]  ;;  %v234_v50 = vld [vmem:[%s878_s10 + $0x30] sm:$0xff] }
  0x39   : > { %329 = vmatpush.msra.mxu1 %v278_v30  ;;  %351 = vmatpush.msra.mxu2 %v243_v31  ;;  %v267_v49 = vld [vmem:[%s878_s10 + $0x138] sm:$0xff]  ;;  %v268_v51 = vld [vmem:[%s878_s10 + $0x140] sm:$0xff]  ;;  %v233_v52 = vld [vmem:[%s878_s10 + $0x28] sm:$0xff] }
  0x3a   : > { %371 = vmatpush.msra.mxu3 %v275_v32  ;;  %311 = vmatpush.msra.mxu0 %v242_v33  ;;  %v265_v53 = vld [vmem:[%s878_s10 + $0x128] sm:$0xff]  ;;  %v232_v54 = vld [vmem:[%s878_s10 + $0x20] sm:$0xff]  ;;  %v266_v55 = vld [vmem:[%s878_s10 + $0x130] sm:$0xff] }
  0x3b   : > { %330 = vmatpush.msra.mxu1 %v276_v34  ;;  %352 = vmatpush.msra.mxu2 %v241_v35  ;;  %v231_v56 = vld [vmem:[%s878_s10 + $0x18] sm:$0xff]  ;;  %v230_v58 = vld [vmem:[%s878_s10 + $0x10] sm:$0xff]  ;;  %v264_v59 = vld [vmem:[%s878_s10 + $0x120] sm:$0xff] }
  0x3c   : > { %372 = vmatpush.msra.mxu3 %v273_v36  ;;  %312 = vmatpush.msra.mxu0 %v240_v37  ;;  %v263_v57 = vld [vmem:[%s878_s10 + $0x118] sm:$0xff]  ;;  %v229_v60 = vld [vmem:[%s878_s10 + $0x8] sm:$0xff]  ;;  %v228_v0 = vld [vmem:[%s878_s10] sm:$0xff] }
  0x3d   : > { %331 = vmatpush.msra.mxu1 %v274_v38  ;;  %353 = vmatpush.msra.mxu2 %v239_v39  ;;  %v261_v61 = vld [vmem:[%s878_s10 + $0x108] sm:$0xff]  ;;  %v299_v62 = vld.sshfl [vmem:[#allocation1] sm:$0xff pattern:$0x75316420]  ;;  %v262_v1 = vld [vmem:[%s878_s10 + $0x110] sm:$0xff] }
  0x3e   : > { %373 = vmatpush.msra.mxu3 %v271_v40  ;;  %313 = vmatpush.msra.mxu0 %v238_v42  ;;  %v300_v63 = vld.sshfl [vmem:[#allocation1 + $0x8] sm:$0xff pattern:$0x75316420]  ;;  %v227_v3 = vld [vmem:[%s996_s2] sm:$0xf] }
  0x3f   : > { %332 = vmatpush.msra.mxu1 %v272_v43  ;;  %354 = vmatpush.msra.mxu2 %v237_v44  ;;  %v260_v2 = vld [vmem:[%s878_s10 + $0x100] sm:$0xff] }
  0x40   : > { %374 = vmatpush.msra.mxu3 %v269_v45  ;;  %314 = vmatpush.msra.mxu0 %v236_v46 }
  0x41   : > { %333 = vmatpush.msra.mxu1 %v270_v47  ;;  %355 = vmatpush.msra.mxu2 %v235_v48 }
  0x42   : > { %375 = vmatpush.msra.mxu3 %v267_v49  ;;  %315 = vmatpush.msra.mxu0 %v234_v50 }
  0x43   : > { %334 = vmatpush.msra.mxu1 %v268_v51  ;;  %356 = vmatpush.msra.mxu2 %v233_v52 }
  0x44   : > { %376 = vmatpush.msra.mxu3 %v265_v53  ;;  %316 = vmatpush.msra.mxu0 %v232_v54 }
  0x45   : > { %335 = vmatpush.msra.mxu1 %v266_v55  ;;  %357 = vmatpush.msra.mxu2 %v231_v56 }
  0x46   : > { %377 = vmatpush.msra.mxu3 %v263_v57  ;;  %317 = vmatpush.msra.mxu0 %v230_v58 }
  0x47   : > { %336 = vmatpush.msra.mxu1 %v264_v59  ;;  %358 = vmatpush.msra.mxu2 %v229_v60 }
  0x48   : > { %378 = vmatpush.msra.mxu3 %v261_v61  ;;  %359 = vmatmul.f32.vlgmr.msra.gmra.mxu2 %v299_v62 }
  0x49   : > { %379 = vmatmul.f32.vlgmr.msra.gmra.mxu3 %v300_v63  ;;  %318 = vmatpush.msra.mxu0 %v228_v0 }
  0x4a   : > { %337 = vmatpush.msra.mxu1 %v262_v1  ;;  %319 = vmatmul.f32.vlgmr.msra.gmra.mxu0 %v299_v62 }
  0x4b   : > { %294 = vperm.xlu0 %600, %v227_v3  }
  0x4c   : > { %338 = vmatpush.msra.mxu1 %v260_v2 }
  0x4d   : > { %339 = vmatmul.f32.vlgmr.msra.gmra.mxu1 %v300_v63 }
  0xbd   : > { %v295_v5 = vpop.permute.xlu0 %294 }
  0xc7   : > { %v320_v6 = vpop.f32.mrf.mxu0 }
  0xc8   : > { %v321_v7 = vadd.f32 %v320_v6, %v295_v5 }
  0xca   : > { %v340_v8 = vpop.f32.mrf.mxu1 }
  0xcb   : > { %v360_v9 = vpop.f32.mrf.mxu2  ;;  %v341_v12 = vadd.f32 %v340_v8, %v321_v7 }
  0xcc   : > { %v380_v10 = vpop.f32.mrf.mxu3  ;;  %v361_v11 = vadd.f32 %v360_v9, %v295_v5 }
  0xcd   : > { %v383_v15 = vmax.f32 %v341_v12, 0.0 }
  0xce   : > { %v381_v13 = vadd.f32 %v380_v10, %v361_v11 }
  0xd0   : > { %v384_v14 = vmax.f32 %v381_v13, 0.0 }
  0xd2   : > { %v387_v16 = vrot.slane %v384_v14, 4 }
  0xd4   : > { %v389_v17 = vsel %vm388_vm0, %v383_v15, %v387_v16 }
  0xd5   : > { %391 = vst [vmem:[%s223_s18] sm:$0xff] %v389_v17 }
  0xd6   : > { %688 = shalt.err (!%p685_p1)
}
  0xd7   : > { %530 = dma.vmem_to_hbm [thread:$0]  (%p825_p8), %s409_s19, 128, %s411_s22, %s393_s15  }
  0xd8 PF: > { %s422_s9 = sand.u32 1, %s727_s12   ;;  %p541_p2 = pnand %p509_p13, %p829_p9 }
  0xd9   : > { %s423_s1 = scalar_lea.sflag [#allocation4], %s422_s9 }
  0xda   : > { %p542_p4 = pneg %p541_p2 }
  0xdc   : > { %722 = dma.done.wait (%p542_p4), %s423_s1, 128  }
  0xdd   : > { %724 = vsyncadd (%p542_p4), %s423_s1, 4294967168  ;;  %s20_s17 = sadd.s32 1, %s747_s17   ;;  %s1007_s12 = smov %s731_s13 }
  0xde   : > { %p17_p6 = scmp.ge.s32.totalorder %s20_s17, 4   ;;  %s1008_s13 = smov %s735_s14 }
  0xdf   : > { %s1009_s14 = smov %s867_s27  ;;  %s1010_s15 = smov %s743_s16 }
  0xe0   : > { %s1011_s16 = smov %s1013_s6  ;;  %19 = sbr.rel (!%p17_p6) target bundleno = 9 (0x9), region = 81 }
  0xe5   :  { %429 = vsyncpa [#allocation3], 1 }
  0xe6   :  { %431 = vsyncpa [#allocation3 + $0x1], 1 }
  0xe7   :  { %432 = vsyncpa [#allocation6], 1 }
  0xe8   :  { %433 = vsyncpa [#allocation4], 1 }
  0xe9   :  { %435 = vsyncpa [#allocation4 + $0x1], 1 }

</bundles_post_ra>
